<compile_context>
chip_gen: v5e
topology: v5e:2x2
jax: 0.10.0
libtpu: 0.0.40
codegen_flags: <defaults>
</compile_context>

<pallas_src>
import functools
import math

import jax
import jax.numpy as jnp
from jax.experimental import pallas as pl
from jax.experimental.pallas import tpu as pltpu


def _pos_encoding_kernel(x_ref, pe_ref, o_ref, *, lane_reps: int):
    """o = x + pe, with pe broadcast across the batch (lane axis) if lane_reps > 1."""
    pe_row = pe_ref[...]                                    # (TS, D) or (TS, B*D)
    if lane_reps > 1:
        # Replicate the (TS, D) pe block across the batch along the lane axis.
        # D is a multiple of 128 on this path, so the minor-dim concat is an
        # aligned, cheap in-VMEM op; pe HBM traffic stays at S*D, not S*B*D.
        pe_row = jnp.concatenate([pe_row] * lane_reps, axis=-1)
    o_ref[...] = (x_ref[...] + pe_row).astype(o_ref.dtype)
    # TODO(synk): training-mode dropout(p=0.1) would draw a keep-mask here via
    # pltpu.prng_seed + pltpu.stateful_bernoulli; eval mode is identity.


def make_positional_encoding(d_model: int, max_len: int) -> jnp.ndarray:
    """Mirrors PositionalEncoding.__init__: returns pe of shape (max_len, 1, d_model)."""
    assert d_model % 2 == 0, "PositionalEncoding assumes an even d_model"
    position = jnp.arange(max_len, dtype=jnp.float32)[:, None]             # (L, 1)
    div_term = jnp.exp(jnp.arange(0, d_model, 2, dtype=jnp.float32)
                       * (-math.log(10000.0) / d_model))                   # (D/2,)
    pe = jnp.zeros((max_len, 1, d_model), dtype=jnp.float32)
    pe = pe.at[:, 0, 0::2].set(jnp.sin(position * div_term))
    pe = pe.at[:, 0, 1::2].set(jnp.cos(position * div_term))
    return pe


def _vmem_capacity_bytes() -> int:
    try:
        cap = int(pltpu.get_tpu_info().vmem_capacity_bytes)
        if cap > 0:
            return cap
    except Exception:
        pass
    return 64 * 1024 * 1024   # conservative fallback = v7x physical VMEM per TC


def _round_down8(n: int) -> int:
    return max(8, (n // 8) * 8)


def _round_up8(n: int) -> int:
    return ((n + 7) // 8) * 8


def positional_encoding(x: jnp.ndarray, pe: jnp.ndarray, use_pallas=None) -> jnp.ndarray:
    """x: (S, B, D); pe: (max_len, 1, D)  ->  (S, B, D) = x + pe[:S]  (eval-mode)."""
    S, B, D = x.shape
    assert pe.shape[0] >= S and pe.shape[1] == 1 and pe.shape[2] == D

    pe_s = pe[:S, 0, :].astype(x.dtype)                     # (S, D), cast once
    itemsize = jnp.dtype(x.dtype).itemsize

    # Tiny inputs: launch + per-step pipeline overhead dwarfs the work and a
    # plain add can fuse into neighboring XLA ops.
    if use_pallas is None:
        use_pallas = S * B * D * itemsize >= (256 * 1024)
    if not use_pallas:
        return x + pe_s[:, None, :]

    BD = B * D
    x2 = x.reshape(S, BD)                                   # row-major contiguous: free

    if B == 1 or D % 128 == 0:
        # Keep pe at (S, D) in HBM; broadcast across the batch inside the kernel.
        pe_arr, lane_reps, pe_cols = pe_s, B, D
    else:
        # d_model not lane-aligned (e.g. < 128): pre-tile pe once so both
        # operands are dense 2-D slabs and the kernel is a plain add.
        pe_arr, lane_reps, pe_cols = jnp.tile(pe_s, (1, B)), 1, BD

    # --- sequence-tile size from a generation-aware VMEM byte budget ---------
    vmem_cap = _vmem_capacity_bytes()                       # 128 MiB v5e/v6e, 64 MiB v7x
    vmem_limit = max(16 * 1024 * 1024,
                     min(vmem_cap * 3 // 4, 96 * 1024 * 1024))
    tile_budget = vmem_limit // 3                           # headroom for live tile bufs
    # Per row of TS, double-buffered: x tile + out tile + pe tile.
    bytes_per_row = 2 * (2 * BD + pe_cols) * itemsize
    ts_budget = _round_down8(tile_budget // max(bytes_per_row, 1))
    # Keep >= 4 grid steps when S allows: 2 tiles per TensorCore on v7x and a
    # real DMA/compute software pipeline on single-core v5e/v6e.
    ts_steps = _round_up8(pl.cdiv(S, 4))
    TS = min(S, ts_budget, ts_steps)
    if TS < S:
        TS = _round_down8(TS)      # 2nd-to-last block dim must be a multiple of 8
    grid = (pl.cdiv(S, TS),)

    out2 = pl.pallas_call(
        functools.partial(_pos_encoding_kernel, lane_reps=lane_reps),
        out_shape=jax.ShapeDtypeStruct((S, BD), x.dtype),
        grid=grid,
        in_specs=[
            pl.BlockSpec((TS, BD), lambda i: (i, 0)),       # activations (lane-dense)
            pl.BlockSpec((TS, pe_cols), lambda i: (i, 0)),  # pe rows
        ],
        out_specs=pl.BlockSpec((TS, BD), lambda i: (i, 0)),
        input_output_aliases={0: 0},                        # output may reuse x's buffer
        compiler_params=pltpu.CompilerParams(
            dimension_semantics=("parallel",),              # megacore sharding on v7x
            vmem_limit_bytes=int(vmem_limit),
        ),
    )(x2, pe_arr)
    return out2.reshape(S, B, D)


if __name__ == "__main__":
    key = jax.random.PRNGKey(0)

    # --- 1) module-consistent small shape: seq=8, batch=2, d_model=32 -------
    d_model, max_len, S, B = 32, 64, 8, 2
    pe_a = make_positional_encoding(d_model, max_len)
    x_a = jax.random.normal(key, (S, B, d_model), dtype=jnp.float32)

    forced = jax.jit(lambda x, pe: positional_encoding(x, pe, use_pallas=True))
    out_a = jax.block_until_ready(forced(x_a, pe_a))
    ref_a = x_a + pe_a[:S]
    assert out_a.shape == (S, B, d_model)
    assert jnp.allclose(out_a, ref_a, atol=1e-6, rtol=1e-6)

    # Auto dispatch at this tiny size takes the fused-XLA fallback; same numerics.
    out_a2 = jax.block_until_ready(jax.jit(positional_encoding)(x_a, pe_a))
    assert jnp.allclose(out_a2, ref_a, atol=1e-6, rtol=1e-6)

    # --- 2) lane-aligned d_model: in-kernel batch broadcast path -------------
    d_model, S, B = 128, 16, 2
    pe_b = make_positional_encoding(d_model, 32)
    x_b = jax.random.normal(jax.random.fold_in(key, 1), (S, B, d_model), jnp.float32)
    out_b = jax.block_until_ready(forced(x_b, pe_b))
    assert jnp.allclose(out_b, x_b + pe_b[:S], atol=1e-6, rtol=1e-6)

    # --- 3) bf16 activations + multi-step grid (auto dispatch uses Pallas) ---
    d_model, S, B = 128, 256, 4
    pe_c = make_positional_encoding(d_model, 512)
    x_c = jax.random.normal(jax.random.fold_in(key, 2), (S, B, d_model), jnp.bfloat16)
    out_c = jax.block_until_ready(jax.jit(positional_encoding)(x_c, pe_c))
    ref_c = x_c + pe_c[:S].astype(jnp.bfloat16)
    assert out_c.dtype == jnp.bfloat16
    assert jnp.allclose(out_c.astype(jnp.float32), ref_c.astype(jnp.float32),
                        atol=1e-6, rtol=1e-6)

    print("KERNEL_OK")
</pallas_src>

<mosaic_0001>
module attributes {stable_mosaic.version = 11 : i64} {
  func.func @_pos_encoding_kernel(%arg0: i32, %arg1: memref<8x64xf32, #tpu.memory_space<vmem>>, %arg2: memref<8x64xf32, #tpu.memory_space<vmem>>, %arg3: memref<8x64xf32, #tpu.memory_space<vmem>>) attributes {dimension_semantics = [#tpu.dimension_semantics<parallel>], iteration_bounds = array<i64: 1>, scalar_prefetch = 0 : i64, scratch_operands = 0 : i64, tpu.core_type = #tpu.core_type<tc>, window_params = [{transform_indices = @transform_0, window_bounds = array<i64: 8, 64>}, {transform_indices = @transform_1, window_bounds = array<i64: 8, 64>}, {transform_indices = @transform_2, window_bounds = array<i64: 8, 64>}]} {
    %c0 = arith.constant 0 : index
    %c0_0 = arith.constant 0 : index
    %0 = vector.load %arg2[%c0, %c0_0] : memref<8x64xf32, #tpu.memory_space<vmem>>, vector<8x64xf32>
    %c0_1 = arith.constant 0 : index
    %c0_2 = arith.constant 0 : index
    %1 = vector.load %arg1[%c0_1, %c0_2] : memref<8x64xf32, #tpu.memory_space<vmem>>, vector<8x64xf32>
    %2 = arith.addf %1, %0 : vector<8x64xf32>
    %c0_3 = arith.constant 0 : index
    %c0_4 = arith.constant 0 : index
    %3 = vector.load %arg3[%c0_3, %c0_4] : memref<8x64xf32, #tpu.memory_space<vmem>>, vector<8x64xf32>
    tpu.vector_store %arg3[%c0_3, %c0_4], %2 {strides = array<i32>} : memref<8x64xf32, #tpu.memory_space<vmem>>, vector<8x64xf32>,
    return
  }
  func.func @transform_0(%arg0: i32) -> (i32, i32) {
    %c0_i32 = arith.constant 0 : i32
    %c0_i32_0 = arith.constant 0 : i32
    return %arg0, %c0_i32 : i32, i32
  }
  func.func @transform_1(%arg0: i32) -> (i32, i32) {
    %c0_i32 = arith.constant 0 : i32
    %c0_i32_0 = arith.constant 0 : i32
    return %arg0, %c0_i32 : i32, i32
  }
  func.func @transform_2(%arg0: i32) -> (i32, i32) {
    %c0_i32 = arith.constant 0 : i32
    %c0_i32_0 = arith.constant 0 : i32
    return %arg0, %c0_i32 : i32, i32
  }
}

</mosaic_0001>

<bundles_post_ra>
// kernel: tile.7
= control target key start
LH: loop header
LB: loop body
LE: loop exit
PB: predicated region body
PF: predicated region fallthrough
CT: control target
= control target key end

     0   :  { %vm36_vm0 = vcmask 1047556   ;;  %vm38_vm1 = vcmask 261120   ;;  %vm48_vm2 = vcmask 523520   ;;  %s99_s0 = inlined_call_operand.vmem [shape: f32[8,2,32], index: 0, kind: input, shape index: {}]   ;;  %s100_s1 = inlined_call_operand.vmem [shape: f32[8,64], index: 1, kind: output, shape index: {}]  }
   0x1   :  { %v50_v0 = vld [vmem:[%s99_s0 + $0xe] sm:$0x3]  ;;  %v51_v1 = vld [vmem:[%s99_s0 + $0xc] sm:$0x3]  ;;  %v52_v2 = vld [vmem:[%s99_s0 + $0xa] sm:$0x3] }
   0x2   :  { %7 = vst [vmem:[#allocation0 + $0x38] sm:$0x3] %v50_v0  ;;  %v53_v3 = vld [vmem:[%s99_s0 + $0x8] sm:$0x3]  ;;  %v54_v4 = vld [vmem:[%s99_s0 + $0x6] sm:$0x3] }
   0x3   :  { %11 = vst [vmem:[#allocation0 + $0x30] sm:$0x3] %v51_v1  ;;  %v55_v5 = vld [vmem:[%s99_s0 + $0x4] sm:$0x3]  ;;  %v56_v6 = vld [vmem:[%s99_s0 + $0x2] sm:$0x3] }
   0x4   :  { %15 = vst [vmem:[#allocation0 + $0x28] sm:$0x3] %v52_v2  ;;  %v32_v7 = vld [vmem:[%s99_s0] sm:$0x3]  ;;  %s58_s0 = smov 32  }
   0x5   :  { %19 = vst [vmem:[#allocation0 + $0x20] sm:$0x3] %v53_v3 }
   0x6   :  { %23 = vst [vmem:[#allocation0 + $0x18] sm:$0x3] %v54_v4 }
   0x7   :  { %27 = vst [vmem:[#allocation0 + $0x10] sm:$0x3] %v55_v5 }
   0x8   :  { %31 = vst [vmem:[#allocation0 + $0x8] sm:$0x3] %v56_v6 }
   0x9   :  { %33 = vst [vmem:[#allocation0] sm:$0x3] %v32_v7 }
   0xc   :  { %v35_v8 = vld [vmem:[#allocation0] ss:$8 sm:$0xf0]   ;;  %v43_v9 = vld [vmem:[#allocation0 + $0x1] ss:$8 sm:$0xf0]  }
  0x10   :  { %v34_v10 = vld [vmem:[#allocation0] ss:$8 sm:$0xf]   ;;  %v41_v11 = vld [vmem:[#allocation0 + $0x1] ss:$8 sm:$0xf]  }
  0x11   :  { %v37_v12 = vsel %vm36_vm0, %v35_v8, %v34_v10  ;;  %v45_v13 = vsel %vm36_vm0, %v43_v9, %v41_v11 }
  0x12   :  { %46 = vrot.lane.b32.xlu0 %v45_v13, %s58_s0  ;;  %39 = vst.msk [vmem:[%s100_s1] sm:$0xff] %vm38_vm1, %v37_v12  }
  0x84   :  { %v47_v14 = vpop.permute.xlu0 %46  }
  0x85   :  { %49 = vst.msk [vmem:[%s100_s1] sm:$0xff] %vm48_vm2, %v47_v14  }

// kernel: _lambda_.1
= control target key start
LH: loop header
LB: loop body
LE: loop exit
PB: predicated region body
PF: predicated region fallthrough
CT: control target
= control target key end

     0   :  { %vm14_vm0 = vcmask 523264   ;;  %s44_s0 = inlined_call_operand.vmem [shape: f32[8,64], index: 0, kind: input, shape index: {}, may-alias: {0,2}]   ;;  %s45_s1 = inlined_call_operand.vmem [shape: f32[8,64], index: 1, kind: input, shape index: {}]   ;;  %s46_s2 = inlined_call_operand.vmem [shape: f32[8,64], index: 2, kind: output, shape index: {}, may-alias: {0,2}]  }
   0x1   :  { %v11_v0 = vld [vmem:[%s45_s1] sm:$0xff] }
   0x2   :  { %v12_v1 = vld [vmem:[%s44_s0] sm:$0xff] }
   0x3   :  { %v13_v2 = vadd.f32 %v12_v1, %v11_v0 }
   0x5   :  { %15 = vst.msk [vmem:[%s46_s2] sm:$0xff] %vm14_vm0, %v13_v2 }

</bundles_post_ra>
